<compile_context>
chip_gen: v7x
topology: tpu7x:2x2x1
jax: 0.10.0
libtpu: 0.0.40
codegen_flags: <defaults>
</compile_context>

<pallas_src>
import functools

import jax
import jax.numpy as jnp
from jax.experimental import pallas as pl
from jax.experimental.pallas import tpu as pltpu


# ----------------------------------------------------------------------------
# Tiling choices
# ----------------------------------------------------------------------------
def _choose_tiles(num_pillars):
    """Returns (pc, bm): pillars per inner chunk, pillars per grid step."""
    pc = 8
    while pc > 1 and num_pillars % pc != 0:
        pc //= 2
    if num_pillars <= 1024:
        bm = num_pillars          # one block along pillars: no forced splits
    else:
        bm = 1024                 # multiple of 128 and of 8*pc; ~4 MiB VMEM/step
    return pc, bm


# ----------------------------------------------------------------------------
# Fused kernel: 1x1 conv (BN-scale-folded matmul) + ReLU + max over points
# ----------------------------------------------------------------------------
def _pfn_fused_kernel(x_ref, w_ref, shift_ref, o_ref, acc_ref, *,
                      n_points, pc, n_chunks):
    # x_ref:     (1, C, n_chunks, pc*n_points) f32  (pillars*points lane-dense)
    # w_ref:     (C, U)   f32, BN scale folded into the conv weight
    # shift_ref: (U, 1)   f32, folded BN shift
    # o_ref:     (1, U, bm) f32, bm = n_chunks * pc  (pillars on lanes)
    # acc_ref:   (bm, U)  f32 scratch holding per-pillar maxima
    units = w_ref.shape[1]

    def chunk_body(j, carry):
        xc = x_ref[0, :, j, :]                                    # (C, pc*N)
        # (pc*N, C) @ (C, U): tiny stationary weights, bounded intermediate.
        y = jnp.dot(xc.T, w_ref[...], preferred_element_type=jnp.float32)
        m = jnp.max(y.reshape(pc, n_points, units), axis=1)       # (pc, U)
        row = pl.multiple_of(j * pc, pc)
        acc_ref[pl.ds(row, pc), :] = m
        return carry

    jax.lax.fori_loop(0, n_chunks, chunk_body, 0)

    # relu(max_n(y_n) + shift) == max_n(relu(y_n + shift)) (monotone ops), so the
    # bias+ReLU (and the layout transpose) touch only the reduced tile.
    o_ref[0] = jnp.maximum(acc_ref[...].T + shift_ref[...], 0.0
                           ).astype(o_ref.dtype)


def pfn_layer_fused(features, w_folded, shift):
    """features: (B, C, P, N) float32.  Returns (B, U, P)."""
    B, C, P, N = features.shape
    U = w_folded.shape[1]
    pc, bm = _choose_tiles(P)
    cpb = bm // pc                                  # chunks per grid step
    n_chunks_total = P // pc
    # Free reshape (merges contiguous trailing dims, no HBM pass).
    x4 = features.reshape(B, C, n_chunks_total, pc * N)

    kernel = functools.partial(_pfn_fused_kernel, n_points=N, pc=pc,
                               n_chunks=cpb)
    out = pl.pallas_call(
        kernel,
        grid=(B, pl.cdiv(n_chunks_total, cpb)),
        in_specs=[
            pl.BlockSpec((1, C, cpb, pc * N), lambda b, i: (b, 0, i, 0)),
            pl.BlockSpec((C, U), lambda b, i: (0, 0)),
            pl.BlockSpec((U, 1), lambda b, i: (0, 0)),
        ],
        out_specs=pl.BlockSpec((1, U, bm), lambda b, i: (b, 0, i)),
        out_shape=jax.ShapeDtypeStruct((B, U, P), jnp.float32),
        scratch_shapes=[pltpu.VMEM((bm, U), jnp.float32)],
        compiler_params=pltpu.CompilerParams(
            dimension_semantics=("parallel", "parallel")),
    )(x4, w_folded, shift)
    return out


# ----------------------------------------------------------------------------
# Parameters (deterministic synthetic; torch-like raw params + one-time prep)
# ----------------------------------------------------------------------------
def init_pfn_raw_params(key, num_input_features=4, num_filters=(64,)):
    assert len(num_filters) == 1, "only default single-PFNLayer config"
    c_in, units = num_input_features, num_filters[0]
    k1, k2, k3, k4, k5 = jax.random.split(key, 5)
    w = jax.random.normal(k1, (units, c_in), jnp.float32) / jnp.sqrt(
        jnp.float32(c_in))                                    # Conv2d 1x1, no bias
    gamma = 1.0 + 0.1 * jax.random.normal(k2, (units,), jnp.float32)
    beta = 0.1 * jax.random.normal(k3, (units,), jnp.float32)
    mean = 0.1 * jax.random.normal(k4, (units,), jnp.float32)
    var = 1.0 + 0.1 * jnp.abs(jax.random.normal(k5, (units,), jnp.float32))
    return dict(w=w, gamma=gamma, beta=beta, mean=mean, var=var, eps=1e-3)


def prepare_pfn_params(raw):
    """One-time weight prep: fold eval-mode BatchNorm into the conv weight."""
    scale = raw["gamma"] / jnp.sqrt(raw["var"] + raw["eps"])
    shift = raw["beta"] - raw["mean"] * scale
    w_folded = (raw["w"] * scale[:, None]).T.astype(jnp.float32)   # (C, U)
    return dict(w=w_folded, shift=shift.reshape(-1, 1).astype(jnp.float32))


# ----------------------------------------------------------------------------
# Forward (matches PillarFeatureNet.forward for the default config)
# ----------------------------------------------------------------------------
@jax.jit
def pillar_feature_net_forward(params, features):
    """features: (B, C_in, P, N), the Conv2d-layout input of the PyTorch module.
    Returns torch's x_max.squeeze(): (B, U, P) for B>1, (U, P) for B==1."""
    out = pfn_layer_fused(features, params["w"], params["shift"])   # (B, U, P)
    return jnp.squeeze(out)


# ----------------------------------------------------------------------------
# Pure-JAX reference (un-folded BN) for a numeric check
# ----------------------------------------------------------------------------
def pillar_feature_net_reference(raw, features):
    x = jnp.einsum("bcpn,uc->bupn", features, raw["w"])
    inv = raw["gamma"] / jnp.sqrt(raw["var"] + raw["eps"])
    x = (x - raw["mean"][None, :, None, None]) * inv[None, :, None, None] \
        + raw["beta"][None, :, None, None]
    x = jnp.maximum(x, 0.0)
    x = jnp.max(x, axis=3, keepdims=True)
    return jnp.squeeze(x)


if __name__ == "__main__":
    key = jax.random.PRNGKey(0)
    k_params, k_x = jax.random.split(key)

    B, C_IN, P, N = 2, 4, 256, 32     # batch, input features, pillars, points/pillar
    UNITS = 64

    raw = init_pfn_raw_params(k_params, num_input_features=C_IN,
                              num_filters=(UNITS,))
    params = prepare_pfn_params(raw)

    features = jax.random.normal(k_x, (B, C_IN, P, N), jnp.float32)

    out = pillar_feature_net_forward(params, features)
    out = jax.block_until_ready(out)

    assert out.shape == (B, UNITS, P), out.shape
    assert bool(jnp.all(jnp.isfinite(out)))

    ref = pillar_feature_net_reference(raw, features)
    assert ref.shape == out.shape
    max_err = float(jnp.max(jnp.abs(out - ref)))
    assert max_err < 1e-2, f"max abs err {max_err}"

    print("KERNEL_OK")
</pallas_src>

<mosaic_0001>
module attributes {stable_mosaic.version = 11 : i64} {
  func.func @_pfn_fused_kernel(%arg0: i32, %arg1: i32, %arg2: memref<1x4x32x256xf32, #tpu.memory_space<vmem>>, %arg3: memref<4x64xf32, #tpu.memory_space<vmem>>, %arg4: memref<64x1xf32, #tpu.memory_space<vmem>>, %arg5: memref<1x64x256xf32, #tpu.memory_space<vmem>>, %arg6: memref<256x64xf32, #tpu.memory_space<vmem>>) attributes {dimension_semantics = [#tpu.dimension_semantics<parallel>, #tpu.dimension_semantics<parallel>], iteration_bounds = array<i64: 2, 1>, scalar_prefetch = 0 : i64, scratch_operands = 1 : i64, tpu.core_type = #tpu.core_type<tc>, window_params = [{transform_indices = @transform_0, window_bounds = array<i64: 1, 4, 32, 256>}, {pipeline_mode = #tpu.pipeline_mode<synchronous>, transform_indices = @transform_1, window_bounds = array<i64: 4, 64>}, {pipeline_mode = #tpu.pipeline_mode<synchronous>, transform_indices = @transform_2, window_bounds = array<i64: 64, 1>}, {transform_indices = @transform_3, window_bounds = array<i64: 1, 64, 256>}]} {
    %c0_i32 = arith.constant 0 : i32
    %c32_i32 = arith.constant 32 : i32
    %0 = arith.addi %c0_i32, %c32_i32 : i32
    %c1_i32 = arith.constant 1 : i32
    scf.for %arg7 = %c0_i32 to %0 step %c1_i32  : i32 {
      %c0_7 = arith.constant 0 : index
      %c0_8 = arith.constant 0 : index
      %11 = arith.index_cast %arg7 : i32 to index
      %c0_9 = arith.constant 0 : index
      %12 = vector.load %arg2[%c0_7, %c0_8, %11, %c0_9] : memref<1x4x32x256xf32, #tpu.memory_space<vmem>>, vector<1x4x1x256xf32>
      %13 = vector.shape_cast %12 : vector<1x4x1x256xf32> to vector<4x256xf32>
      %14 = tpu.transpose %13, [1, 0] : vector<4x256xf32> -> vector<256x4xf32>
      %c0_10 = arith.constant 0 : index
      %c0_11 = arith.constant 0 : index
      %15 = vector.load %arg3[%c0_10, %c0_11] : memref<4x64xf32, #tpu.memory_space<vmem>>, vector<4x64xf32>
      %cst_12 = arith.constant dense<0.000000e+00> : vector<256x64xf32>
      %16 = tpu.matmul %14, %15, %cst_12 {dimension_numbers = #tpu.dot_dimension_numbers<[1], [0], [0], [1], [0, 0, 1, 1], [], []>} : vector<256x4xf32>, vector<4x64xf32>, vector<256x64xf32> -> vector<256x64xf32>
      %17 = vector.shape_cast %16 : vector<256x64xf32> to vector<8x32x64xf32>
      %cst_13 = arith.constant dense<0xFF800000> : vector<8x64xf32>
      %18 = vector.multi_reduction <maximumf>, %17, %cst_13 [1] : vector<8x32x64xf32> to vector<8x64xf32>
      %c8_i32 = arith.constant 8 : i32
      %19 = arith.muli %arg7, %c8_i32 : i32
      %20 = tpu.assume_multiple %19, 8 : i32
      %21 = arith.index_cast %20 : i32 to index
      %c0_14 = arith.constant 0 : index
      %22 = vector.load %arg6[%21, %c0_14] : memref<256x64xf32, #tpu.memory_space<vmem>>, vector<8x64xf32>
      tpu.vector_store %arg6[%21, %c0_14], %18 {strides = array<i32>} : memref<256x64xf32, #tpu.memory_space<vmem>>, vector<8x64xf32>,
    }
    %c32_i32_0 = arith.constant 32 : i32
    %c0 = arith.constant 0 : index
    %c0_1 = arith.constant 0 : index
    %1 = vector.load %arg6[%c0, %c0_1] : memref<256x64xf32, #tpu.memory_space<vmem>>, vector<256x64xf32>
    %2 = tpu.transpose %1, [1, 0] : vector<256x64xf32> -> vector<64x256xf32>
    %c0_2 = arith.constant 0 : index
    %c0_3 = arith.constant 0 : index
    %3 = vector.load %arg4[%c0_2, %c0_3] : memref<64x1xf32, #tpu.memory_space<vmem>>, vector<64x1xf32>
    %4 = vector.broadcast %3 : vector<64x1xf32> to vector<64x256xf32>
    %5 = arith.addf %2, %4 : vector<64x256xf32>
    %cst = arith.constant 0.000000e+00 : f32
    %6 = vector.broadcast %cst : f32 to vector<64x256xf32>
    %7 = arith.maximumf %5, %6 : vector<64x256xf32>
    %c0_4 = arith.constant 0 : index
    %c0_5 = arith.constant 0 : index
    %c0_6 = arith.constant 0 : index
    %8 = vector.load %arg5[%c0_4, %c0_5, %c0_6] : memref<1x64x256xf32, #tpu.memory_space<vmem>>, vector<1x64x256xf32>
    %9 = vector.shape_cast %8 : vector<1x64x256xf32> to vector<64x256xf32>
    %10 = vector.shape_cast %7 : vector<64x256xf32> to vector<1x64x256xf32>
    tpu.vector_store %arg5[%c0_4, %c0_5, %c0_6], %10 {strides = array<i32>} : memref<1x64x256xf32, #tpu.memory_space<vmem>>, vector<1x64x256xf32>,
    return
  }
  func.func @transform_0(%arg0: i32, %arg1: i32) -> (i32, i32, i32, i32) {
    %c0_i32 = arith.constant 0 : i32
    %c0_i32_0 = arith.constant 0 : i32
    %c0_i32_1 = arith.constant 0 : i32
    return %arg0, %c0_i32, %arg1, %c0_i32_0 : i32, i32, i32, i32
  }
  func.func @transform_1(%arg0: i32, %arg1: i32) -> (i32, i32) {
    %c0_i32 = arith.constant 0 : i32
    %c0_i32_0 = arith.constant 0 : i32
    %c0_i32_1 = arith.constant 0 : i32
    return %c0_i32, %c0_i32_0 : i32, i32
  }
  func.func @transform_2(%arg0: i32, %arg1: i32) -> (i32, i32) {
    %c0_i32 = arith.constant 0 : i32
    %c0_i32_0 = arith.constant 0 : i32
    %c0_i32_1 = arith.constant 0 : i32
    return %c0_i32, %c0_i32_0 : i32, i32
  }
  func.func @transform_3(%arg0: i32, %arg1: i32) -> (i32, i32, i32) {
    %c0_i32 = arith.constant 0 : i32
    %c0_i32_0 = arith.constant 0 : i32
    return %arg0, %c0_i32, %arg1 : i32, i32, i32
  }
}

</mosaic_0001>

<bundles_post_ra>
// kernel: pillar_feature_net_forward.1
= control target key start
LH: loop header
LB: loop body
LE: loop exit
PB: predicated region body
PF: predicated region fallthrough
CT: control target
= control target key end

     0   :  { %8 = vsyncpa [#allocation4], 0  ;;  %s1669_s0 = inlined_call_operand.vmem [shape: f32[2,4,32,256], index: 0, kind: input, shape index: {}]   ;;  %s1670_s1 = inlined_call_operand.vmem [shape: f32[4,64], index: 1, kind: input, shape index: {}]   ;;  %s1671_s2 = inlined_call_operand.vmem [shape: f32[64,1], index: 2, kind: input, shape index: {}]   ;;  %s1672_s3 = inlined_call_operand.hbm [shape: f32[2,64,256], index: 3, kind: output, shape index: {}]  }
   0x1   :  { %10 = vsyncpa [#allocation4 + $0x1], 0  ;;  %s1425_s12 = smov 0   ;;  %s1427_s13 = smov 0  }
   0x2   :  { %s1429_s14 = smov 0   ;;  %s1431_s15 = smov 0  }
   0x3   :  { %s1433_s16 = smov 0   ;;  %s1435_s17 = smov 0  }
   0x4 LB: > { %s1099_s18 = sadd.s32 4294967295, %s1394_s17   ;;  %s1100_s19 = sadd.s32 4294967294, %s1394_s17   ;;  %s1394_s17 = sphi %s1435_s17, %s16_s17   ;;  %s1390_s16 = sphi %s1433_s16, %s1679_s16   ;;  %s1386_s15 = sphi %s1431_s15, %s1678_s15   ;;  %s1382_s14 = sphi %s1429_s14, %s1677_s14   ;;  %s1378_s13 = sphi %s1427_s13, %s1676_s13   ;;  %s1374_s12 = sphi %s1425_s12, %s1675_s12  }
   0x5   : > { %s28_s20 = sadd.s32 1, %s1390_s16  ;;  %s107_s21 = sadd.s32 1, %s1382_s14 }
   0x6   : > { %p30_p0 = scmp.ge.s32.totalorder %s28_s20, 2  ;;  %p117_p1 = scmp.ne.s32.totalorder %s1382_s14, %s1378_s13 }
   0x7   : > { %p118_p2 = scmp.eq.s32.totalorder %s1099_s18, 1  ;;  %p123_p3 = scmp.ne.s32.totalorder %s1378_s13, %s1374_s12 }
   0x8   : > { %s1681_s20 = smov (%p30_p0, %s28_s20), 0  ;;  %p124_p5 = scmp.eq.s32.totalorder %s1100_s19, 1 }
   0x9   : > { %p1465_p4 = por %p118_p2, %p117_p1  ;;  %s102_s23 = ssub.s32 %s1390_s16, %s1681_s20 }
   0xa   : > { %p1103_p6 = scmp.ge.s32.totalorder %s1394_s17, 1  ;;  %p105_p7 = scmp.eq.s32.totalorder %s102_s23, 0 }
   0xb   : > { %p1472_p8 = por %p124_p5, %p123_p3  ;;  %p162_p9 = scmp.lt.s32.totalorder %s1394_s17, 3 }
   0xc   : > { %s1478_s25 = scalar_select %p105_p7, %s1382_s14, %s107_s21  }
   0xd   : > { %p163_p10 = pnand %p1103_p6, %p162_p9 }
   0xe   : > { %s188_s26 = sand.u32 (!%p163_p10), 1, %s1378_s13   ;;  %p192_p11 = scmp.lt.s32.totalorder (!%p163_p10), %s1386_s15, 1 }
   0xf   : > { %166 = sbr.rel (%p163_p10) target bundleno = 792 (0x318), region = 32  ;;  %s1104_s27 = sshll.u32 (!%p163_p10), %s188_s26, 7 }
  0x10   : > { %s1490_s6 = scalar_lea.vmem (!%p163_p10), [#allocation3], %s1104_s27  ;;  %s1492_s7 = smov (!%p163_p10), 0  }
  0x16   : > { %s193_s28 = scalar_select %p192_p11, %s1386_s15, 1 }
  0x18   : > { %s1154_s29 = sshll.u32 %s193_s28, 8 }
  0x19   : > { %s1488_s5 = scalar_lea.vmem %s1669_s0, %s1154_s29 }
  0x1a LB: >> { %v236_v0 = vlaneseq  ;;  %v1400_v1 = vmov 1966171168   ;;  %s209_s8 = sshra.s32 %s1398_s7, 3  ;;  %s212_s9 = sand.u32 7, %s1398_s7  ;;  %v329_v16 = vld [vmem:[%s1670_s1] sm:$0xf]  ;;  %s1398_s7 = sphi %s1492_s7, %s208_s7  }
  0x1b   : >> { %v234_v2 = vunpack.c.l.s4 %v1400_v1  ;;  %s1155_s10 = sshll.u32 %s209_s8, 4  ;;  %vm427_vm0 = vcmask 1043456   ;;  %vm330_vm1 = vcmask 31744   ;;  %vm656_vm2 = vcmask 523264   ;;  %s1148_s23 = sshll.u32 %s1398_s7, 3 }
  0x1c   : >> { %v237_v3 = vshrl.u32 %v236_v0, 7  ;;  %s215_s11 = sadd.s32 %s1155_s10, %s212_s9  ;;  %1190 = vmatprep.subr.msk.mxu0 %vm427_vm0, %v329_v16  ;;  %1240 = vmatprep.subr.msk.mxu1 %vm427_vm0, %v329_v16  ;;  %vm770_vm3 = vcmask 1041409   ;;  %vm772_vm4 = vcmask 1042434   ;;  %vm774_vm5 = vcmask 1043459   ;;  %s785_s27 = scalar_lea.vmem [#allocation2], %s1148_s23 }
  0x1d   : >> { %v235_v4 = vunpack.c.0.s8 %v234_v2  ;;  %s216_s18 = scalar_lea.vmem %s1488_s5, %s215_s11  ;;  %1191 = vmatpush3.msk.msra.mxu0 %vm427_vm0, %v329_v16  ;;  %1241 = vmatpush3.msk.msra.mxu1 %vm427_vm0, %v329_v16  ;;  %vm776_vm6 = vcmask 1044484   ;;  %vm778_vm7 = vcmask 1045509   ;;  %vm780_vm8 = vcmask 1046534   ;;  %s208_s7 = sadd.s32 1, %s1398_s7  }
  0x1e   : >> { %v217_v6 = vld [vmem:[%s216_s18] ss:$8 sm:$0x3]  ;;  %vm782_vm9 = vcmask 1047559   ;;  %p205_p12 = scmp.ge.s32.totalorder %s208_s7, 32  }
  0x1f   : >> { %v238_v5 = vsub.s32 %v235_v4, %v237_v3  ;;  %v1110_v7 = vld [vmem:[%s216_s18 + $0x40] ss:$8 sm:$0x3]  ;;  %s1156_s29 = sshll.u32 (%p205_p12), %s1386_s15, 11  ;;  %s995_s30 = sshll.u32 (%p205_p12), %s1490_s6, 4  ;;  %s1617_s30 = int_to_ptr.vmem [resolvable:$true] %s995_s30 }
  0x20   : >> { %v1112_v8 = vld [vmem:[%s216_s18 + $0x80] ss:$8 sm:$0x3]  ;;  %v231_v10 = vcombine.low %v217_v6, %v1110_v7  ;;  %s1615_s7 = scalar_lea.hbm (%p205_p12), %s1672_s3, %s1156_s29  ;;  %s1623_s15 = scalar_lea.sflag (%p205_p12), [#allocation4], %s188_s26 }
  0x21   : >> { %v1114_v9 = vld [vmem:[%s216_s18 + $0xc0] ss:$8 sm:$0x3]  ;;  %s1312_s8 = scalar_lea.vmem (%p205_p12), %s1617_s30, 2048  ;;  %s1402_s9 = smov (%p205_p12), [#allocation3]  }
  0x22   : >> { %v232_v11 = vcombine.low %v1112_v8, %v1114_v9  ;;  %v239_v12 = vrot.slane %v231_v10, %v238_v5  ;;  %p1313_p13 = scmp.ne.s32.totalorder (%p205_p12), %s1617_s30, %s1312_s8  ;;  %s1316_s10 = sshll.u32 (%p205_p12), %s1402_s9, 4  ;;  %s1317_s10 = int_to_ptr.vmem [resolvable:$false] %s1316_s10 }
  0x23   : > { %s1318_s11 = scalar_lea.vmem (%p205_p12), %s1317_s10, 4096  ;;  %p1319_p2 = scmp.lt.s32.totalorder (%p205_p12), %s1617_s30, %s1317_s10 }
  0x24   : >> { %v246_v13 = vrot.slane %v232_v11, %v238_v5  ;;  %p1314_p0 = pnand (%p205_p12), %p1313_p13, %p1465_p4  ;;  %p1320_p3 = scmp.lt.s32.totalorder (%p205_p12), %s1318_s11, %s1312_s8 }
  0x26   : >> { %v247_v14 = vcombine.low %v239_v12, %v246_v13  ;;  %v248_v17 = vcombine.high %v239_v12, %v246_v13  ;;  %p1315_p1 = pneg (%p205_p12), %p1314_p0  ;;  %p1321_p5 = por (%p205_p12), %p1320_p3, %p1319_p2 }
  0x28   : >> { %v255_v15 = vrot.slane %v247_v14, %v238_v5  ;;  %v262_v18 = vrot.slane %v248_v17, %v238_v5  ;;  %p1322_p6 = pnand (%p205_p12), %p1321_p5, %p1315_p1 }
  0x2a   : >> { %265 = vxpose.xlu0.b32.start.end [1/1] (short) %v255_v15, 128 }
  0x67   : >> { %297 = vxpose.xlu0.b32.start.end [1/1] (short) %v262_v18, 128 }
  0xaa   : >> { %v281_v19 = vpop.trf.xlu0 }
  0xab   : >> { %1192 = vmatprep.mubr.msk.f32.mxu0 %vm330_vm1, %v281_v19 }
  0xae   : >> { %v282_v20 = vpop.trf.xlu0 }
  0xaf   : >> { %1193 = vmatmul.mubr.msk.f32.vlgmr.msra.gmra.mrb[0].mxu0 %vm330_vm1, %v282_v20 }
  0xb2   : >> { %v283_v21 = vpop.trf.xlu0 }
  0xb3   : >> { %1195 = vmatprep.mubr.msk.f32.mxu0 %vm330_vm1, %v283_v21 }
  0xb6   : >> { %v284_v22 = vpop.trf.xlu0 }
  0xb7   : >> { %1196 = vmatmul.mubr.msk.f32.gmra.mrb[2].mxu0 %vm330_vm1, %v284_v22 }
  0xba   : >> { %v285_v23 = vpop.trf.xlu0 }
  0xbb   : >> { %1198 = vmatprep.mubr.msk.f32.mxu0 %vm330_vm1, %v285_v23 }
  0xbe   : >> { %v286_v24 = vpop.trf.xlu0 }
  0xbf   : >> { %1199 = vmatmul.mubr.msk.f32.gmra.mrb[4].mxu0 %vm330_vm1, %v286_v24 }
  0xc2   : >> { %v287_v25 = vpop.trf.xlu0 }
  0xc3   : >> { %1201 = vmatprep.mubr.msk.f32.mxu0 %vm330_vm1, %v287_v25 }
  0xc6   : >> { %v288_v26 = vpop.trf.xlu0 }
  0xc7   : >> { %1202 = vmatmul.mubr.msk.f32.gmra.mrb[6].mxu0 %vm330_vm1, %v288_v26 }
  0xca   : >> { %v289_v27 = vpop.trf.xlu0 }
  0xcb   : >> { %1204 = vmatprep.mubr.msk.f32.mxu0 %vm330_vm1, %v289_v27 }
  0xce   : >> { %v290_v28 = vpop.trf.xlu0 }
  0xcf   : >> { %1205 = vmatmul.mubr.msk.f32.gmra.mrb[8].mxu0 %vm330_vm1, %v290_v28 }
  0xd2   : >> { %v291_v29 = vpop.trf.xlu0 }
  0xd3   : >> { %1207 = vmatprep.mubr.msk.f32.mxu0 %vm330_vm1, %v291_v29 }
  0xd6   : >> { %v292_v30 = vpop.trf.xlu0 }
  0xd7   : >> { %1208 = vmatmul.mubr.msk.f32.gmra.mrb[10].mxu0 %vm330_vm1, %v292_v30 }
  0xda   : >> { %v293_v31 = vpop.trf.xlu0 }
  0xdb   : >> { %1210 = vmatprep.mubr.msk.f32.mxu0 %vm330_vm1, %v293_v31 }
  0xde   : >> { %v294_v32 = vpop.trf.xlu0 }
  0xdf   : >> { %1211 = vmatmul.mubr.msk.f32.gmra.mrb[12].mxu0 %vm330_vm1, %v294_v32 }
  0xe2   : >> { %v295_v33 = vpop.trf.xlu0 }
  0xe3   : >> { %1213 = vmatprep.mubr.msk.f32.mxu0 %vm330_vm1, %v295_v33 }
  0xe6   : >> { %v296_v34 = vpop.trf.xlu0 }
  0xe7   : >> { %1214 = vmatmul.mubr.msk.f32.gmra.mrb[14].mxu0 %vm330_vm1, %v296_v34 }
  0xea   : >> { %v313_v35 = vpop.trf.xlu0 }
  0xeb   : >> { %1216 = vmatprep.mubr.msk.f32.mxu1 %vm330_vm1, %v313_v35 }
  0xee   : >> { %v314_v36 = vpop.trf.xlu0 }
  0xef   : >> { %1217 = vmatmul.mubr.msk.f32.vlgmr.msra.gmra.mrb[0].mxu1 %vm330_vm1, %v314_v36 }
  0xf2   : >> { %v315_v37 = vpop.trf.xlu0 }
  0xf3   : >> { %1219 = vmatprep.mubr.msk.f32.mxu1 %vm330_vm1, %v315_v37 }
  0xf6   : >> { %v316_v38 = vpop.trf.xlu0 }
  0xf7   : >> { %1220 = vmatmul.mubr.msk.f32.gmra.mrb[2].mxu1 %vm330_vm1, %v316_v38 }
  0xfa   : >> { %v317_v39 = vpop.trf.xlu0 }
  0xfb   : >> { %1222 = vmatprep.mubr.msk.f32.mxu1 %vm330_vm1, %v317_v39 }
  0xfe   : >> { %v318_v40 = vpop.trf.xlu0 }
  0xff   : >> { %1223 = vmatmul.mubr.msk.f32.gmra.mrb[4].mxu1 %vm330_vm1, %v318_v40 }
 0x102   : >> { %v319_v41 = vpop.trf.xlu0 }
 0x103   : >> { %1225 = vmatprep.mubr.msk.f32.mxu1 %vm330_vm1, %v319_v41 }
 0x106   : >> { %v320_v42 = vpop.trf.xlu0 }
 0x107   : >> { %1226 = vmatmul.mubr.msk.f32.gmra.mrb[6].mxu1 %vm330_vm1, %v320_v42 }
 0x10a   : >> { %v321_v43 = vpop.trf.xlu0 }
 0x10b   : >> { %1228 = vmatprep.mubr.msk.f32.mxu1 %vm330_vm1, %v321_v43 }
 0x10e   : >> { %v322_v44 = vpop.trf.xlu0 }
 0x10f   : >> { %1229 = vmatmul.mubr.msk.f32.gmra.mrb[8].mxu1 %vm330_vm1, %v322_v44 }
 0x112   : >> { %v323_v45 = vpop.trf.xlu0 }
 0x113   : >> { %1231 = vmatprep.mubr.msk.f32.mxu1 %vm330_vm1, %v323_v45 }
 0x116   : >> { %v324_v46 = vpop.trf.xlu0 }
 0x117   : >> { %1232 = vmatmul.mubr.msk.f32.gmra.mrb[10].mxu1 %vm330_vm1, %v324_v46 }
 0x11a   : >> { %v325_v47 = vpop.trf.xlu0 }
 0x11b   : >> { %1234 = vmatprep.mubr.msk.f32.mxu1 %vm330_vm1, %v325_v47 }
 0x11e   : >> { %v326_v48 = vpop.trf.xlu0 }
 0x11f   : >> { %1235 = vmatmul.mubr.msk.f32.gmra.mrb[12].mxu1 %vm330_vm1, %v326_v48 }
 0x122   : >> { %v327_v49 = vpop.trf.xlu0 }
 0x123   : >> { %1237 = vmatprep.mubr.msk.f32.mxu1 %vm330_vm1, %v327_v49 }
 0x126   : >> { %v328_v50 = vpop.trf.xlu0 }
 0x127   : >> { %1238 = vmatmul.mubr.msk.f32.gmra.mrb[14].mxu1 %vm330_vm1, %v328_v50 }
 0x182   : >> { %v1194_v51 = vpop.f32.mrb[0].mxu0 }
 0x183   : >> { %v658_v52 = vsel %vm656_vm2, %v1194_v51, -inf  ;;  %v497_v53 = vpop.f32.mrb[1].mxu0 }
 0x184   : >> { %v657_v54 = vsel %vm656_vm2, %v497_v53, -inf }
 0x185   : >> { %v659_v55 = vmax.f32 %v657_v54, %v658_v52 }
 0x18a   : >> { %v1197_v56 = vpop.f32.mrb[2].mxu0 }
 0x18b   : >> { %v507_v57 = vpop.f32.mrb[3].mxu0  ;;  %v662_v60 = vsel %vm656_vm2, %v1197_v56, -inf }
 0x18c   : >> { %v660_v58 = vsel %vm656_vm2, %v507_v57, -inf }
 0x18d   : >> { %v661_v59 = vmax.f32 %v659_v55, %v660_v58 }
 0x18f   : >> { %v663_v61 = vmax.f32 %v661_v59, %v662_v60 }
 0x191   : >> { %v664_v3 = vrot.slane %v663_v61, 4 }
 0x192   : >> { %v1200_v62 = vpop.f32.mrb[4].mxu0 }
 0x193   : >> { %v671_v63 = vsel %vm656_vm2, %v1200_v62, -inf  ;;  %v517_v0 = vpop.f32.mrb[5].mxu0  ;;  %v665_v5 = vmax.f32 %v663_v61, %v664_v3 }
 0x194   : >> { %v670_v1 = vsel %vm656_vm2, %v517_v0, -inf }
 0x195   : >> { %v672_v2 = vmax.f32 %v670_v1, %v671_v63  ;;  %v666_v10 = vrot.slane %v665_v5, 2 }
 0x197   : >> { %v667_v14 = vmax.f32 %v665_v5, %v666_v10 }
 0x199   : >> { %v668_v21 = vrot.slane %v667_v14, 1 }
 0x19a   : >> { %v1203_v4 = vpop.f32.mrb[6].mxu0 }
 0x19b   : >> { %v527_v6 = vpop.f32.mrb[7].mxu0  ;;  %v675_v9 = vsel %vm656_vm2, %v1203_v4, -inf  ;;  %v669_v25 = vmax.f32 %v667_v14, %v668_v21 }
 0x19c   : >> { %v673_v7 = vsel %vm656_vm2, %v527_v6, -inf }
 0x19d   : >> { %v674_v8 = vmax.f32 %v672_v2, %v673_v7 }
 0x19f   : >> { %v676_v11 = vmax.f32 %v674_v8, %v675_v9 }
 0x1a1   : >> { %v677_v12 = vrot.slane %v676_v11, 4 }
 0x1a2   : >> { %v1206_v13 = vpop.f32.mrb[8].mxu0 }
 0x1a3   : >> { %v678_v15 = vmax.f32 %v676_v11, %v677_v12  ;;  %v684_v16 = vsel %vm656_vm2, %v1206_v13, -inf  ;;  %v537_v17 = vpop.f32.mrb[9].mxu0 }
 0x1a4   : >> { %v683_v18 = vsel %vm656_vm2, %v537_v17, -inf }
 0x1a5   : >> { %v679_v19 = vrot.slane %v678_v15, 2  ;;  %v685_v20 = vmax.f32 %v683_v18, %v684_v16 }
 0x1a7   : >> { %v680_v22 = vmax.f32 %v678_v15, %v679_v19 }
 0x1a9   : >> { %v681_v23 = vrot.slane %v680_v22, 1 }
 0x1aa   : >> { %v1209_v24 = vpop.f32.mrb[10].mxu0 }
 0x1ab   : >> { %v682_v26 = vmax.f32 %v680_v22, %v681_v23  ;;  %v547_v27 = vpop.f32.mrb[11].mxu0  ;;  %v688_v31 = vsel %vm656_vm2, %v1209_v24, -inf }
 0x1ac   : >> { %v686_v28 = vsel %vm656_vm2, %v547_v27, -inf }
 0x1ad   : >> { %v771_v29 = vsel %vm770_vm3, %v682_v26, %v669_v25  ;;  %v687_v30 = vmax.f32 %v685_v20, %v686_v28 }
 0x1af   : >> { %v689_v32 = vmax.f32 %v687_v30, %v688_v31 }
 0x1b1   : >> { %v690_v33 = vrot.slane %v689_v32, 4 }
 0x1b2   : >> { %v1212_v34 = vpop.f32.mrb[12].mxu0 }
 0x1b3   : >> { %v691_v35 = vmax.f32 %v689_v32, %v690_v33  ;;  %v697_v36 = vsel %vm656_vm2, %v1212_v34, -inf  ;;  %v557_v37 = vpop.f32.mrb[13].mxu0 }
 0x1b4   : >> { %v696_v38 = vsel %vm656_vm2, %v557_v37, -inf }
 0x1b5   : >> { %v692_v39 = vrot.slane %v691_v35, 2  ;;  %v698_v40 = vmax.f32 %v696_v38, %v697_v36 }
 0x1b7   : >> { %v693_v41 = vmax.f32 %v691_v35, %v692_v39 }
 0x1b9   : >> { %v694_v42 = vrot.slane %v693_v41, 1 }
 0x1ba   : >> { %v1215_v43 = vpop.f32.mrb[14].mxu0 }
 0x1bb   : >> { %v695_v44 = vmax.f32 %v693_v41, %v694_v42  ;;  %v567_v45 = vpop.f32.mrb[15].mxu0  ;;  %v701_v49 = vsel %vm656_vm2, %v1215_v43, -inf }
 0x1bc   : >> { %v699_v46 = vsel %vm656_vm2, %v567_v45, -inf }
 0x1bd   : >> { %v773_v47 = vsel %vm772_vm4, %v695_v44, %v771_v29  ;;  %v700_v48 = vmax.f32 %v698_v40, %v699_v46 }
 0x1bf   : >> { %v702_v50 = vmax.f32 %v700_v48, %v701_v49 }
 0x1c1   : >> { %v703_v51 = vrot.slane %v702_v50, 4 }
 0x1c2   : >> { %v1218_v52 = vpop.f32.mrb[0].mxu1 }
 0x1c3   : >> { %v704_v53 = vmax.f32 %v702_v50, %v703_v51  ;;  %v710_v54 = vsel %vm656_vm2, %v1218_v52, -inf  ;;  %v577_v55 = vpop.f32.mrb[1].mxu1 }
 0x1c4   : >> { %v709_v56 = vsel %vm656_vm2, %v577_v55, -inf }
 0x1c5   : >> { %v705_v57 = vrot.slane %v704_v53, 2  ;;  %v711_v58 = vmax.f32 %v709_v56, %v710_v54 }
 0x1c7   : >> { %v706_v59 = vmax.f32 %v704_v53, %v705_v57 }
 0x1c9   : >> { %v707_v60 = vrot.slane %v706_v59, 1 }
 0x1ca   : >> { %v1221_v61 = vpop.f32.mrb[2].mxu1 }
 0x1cb   : >> { %v708_v62 = vmax.f32 %v706_v59, %v707_v60  ;;  %v587_v63 = vpop.f32.mrb[3].mxu1  ;;  %v714_v3 = vsel %vm656_vm2, %v1221_v61, -inf }
 0x1cc   : >> { %v712_v0 = vsel %vm656_vm2, %v587_v63, -inf }
 0x1cd   : >> { %v775_v1 = vsel %vm774_vm5, %v708_v62, %v773_v47  ;;  %v713_v2 = vmax.f32 %v711_v58, %v712_v0 }
 0x1cf   : >> { %v715_v4 = vmax.f32 %v713_v2, %v714_v3 }
 0x1d1   : >> { %v716_v5 = vrot.slane %v715_v4, 4 }
 0x1d2   : >> { %v1224_v6 = vpop.f32.mrb[4].mxu1 }
 0x1d3   : >> { %v717_v7 = vmax.f32 %v715_v4, %v716_v5  ;;  %v723_v8 = vsel %vm656_vm2, %v1224_v6, -inf  ;;  %v597_v9 = vpop.f32.mrb[5].mxu1 }
 0x1d4   : >> { %v722_v10 = vsel %vm656_vm2, %v597_v9, -inf }
 0x1d5   : >> { %v718_v11 = vrot.slane %v717_v7, 2  ;;  %v724_v12 = vmax.f32 %v722_v10, %v723_v8 }
 0x1d7   : >> { %v719_v13 = vmax.f32 %v717_v7, %v718_v11 }
 0x1d9   : >> { %v720_v14 = vrot.slane %v719_v13, 1 }
 0x1da   : >> { %v1227_v15 = vpop.f32.mrb[6].mxu1 }
 0x1db   : >> { %v721_v16 = vmax.f32 %v719_v13, %v720_v14  ;;  %v607_v17 = vpop.f32.mrb[7].mxu1  ;;  %v727_v21 = vsel %vm656_vm2, %v1227_v15, -inf }
 0x1dc   : >> { %v725_v18 = vsel %vm656_vm2, %v607_v17, -inf }
 0x1dd   : >> { %v777_v19 = vsel %vm776_vm6, %v721_v16, %v775_v1  ;;  %v726_v20 = vmax.f32 %v724_v12, %v725_v18 }
 0x1df   : >> { %v728_v22 = vmax.f32 %v726_v20, %v727_v21 }
 0x1e1   : >> { %v729_v23 = vrot.slane %v728_v22, 4 }
 0x1e2   : >> { %v1230_v24 = vpop.f32.mrb[8].mxu1 }
 0x1e3   : >> { %v730_v25 = vmax.f32 %v728_v22, %v729_v23  ;;  %v736_v26 = vsel %vm656_vm2, %v1230_v24, -inf  ;;  %v617_v27 = vpop.f32.mrb[9].mxu1 }
 0x1e4   : >> { %v735_v28 = vsel %vm656_vm2, %v617_v27, -inf }
 0x1e5   : >> { %v731_v29 = vrot.slane %v730_v25, 2  ;;  %v737_v30 = vmax.f32 %v735_v28, %v736_v26 }
 0x1e7   : >> { %v732_v31 = vmax.f32 %v730_v25, %v731_v29 }
 0x1e9   : >> { %v733_v32 = vrot.slane %v732_v31, 1 }
 0x1ea   : >> { %v1233_v33 = vpop.f32.mrb[10].mxu1 }
 0x1eb   : >> { %v734_v34 = vmax.f32 %v732_v31, %v733_v32  ;;  %v627_v35 = vpop.f32.mrb[11].mxu1  ;;  %v740_v39 = vsel %vm656_vm2, %v1233_v33, -inf }
 0x1ec   : >> { %v738_v36 = vsel %vm656_vm2, %v627_v35, -inf  ;;  %v1401_v35 = vmov (%p205_p12), 0  }
 0x1ed   : >> { %v779_v37 = vsel %vm778_vm7, %v734_v34, %v777_v19  ;;  %v739_v38 = vmax.f32 %v737_v30, %v738_v36  ;;  %v884_v34 = vld [vmem:[%s1671_s2 + $0x8] sm:$0xff] (%p205_p12)  ;;  %v885_v36 = vld [vmem:[%s1671_s2 + $0x10] sm:$0xff] (%p205_p12) }
 0x1ef   : >> { %v741_v40 = vmax.f32 %v739_v38, %v740_v39  ;;  %v883_v38 = vld [vmem:[%s1671_s2] sm:$0xff] (%p205_p12) }
 0x1f0   : > { %v887_v39 = vld [vmem:[%s1671_s2 + $0x20] sm:$0xff] (%p205_p12) }
 0x1f1   : >> { %v742_v41 = vrot.slane %v741_v40, 4 }
 0x1f2   : >> { %v1236_v42 = vpop.f32.mrb[12].mxu1 }
 0x1f3   : >> { %v743_v43 = vmax.f32 %v741_v40, %v742_v41  ;;  %v749_v44 = vsel %vm656_vm2, %v1236_v42, -inf  ;;  %v637_v45 = vpop.f32.mrb[13].mxu1  ;;  %v888_v40 = vld [vmem:[%s1671_s2 + $0x28] sm:$0xff] (%p205_p12)  ;;  %v889_v41 = vld [vmem:[%s1671_s2 + $0x30] sm:$0xff] (%p205_p12)  ;;  %v890_v42 = vld [vmem:[%s1671_s2 + $0x38] sm:$0xff] (%p205_p12) }
 0x1f4   : >> { %v748_v46 = vsel %vm656_vm2, %v637_v45, -inf }
 0x1f5   : >> { %v744_v47 = vrot.slane %v743_v43, 2  ;;  %v750_v48 = vmax.f32 %v748_v46, %v749_v44 }
 0x1f7   : >> { %v745_v49 = vmax.f32 %v743_v43, %v744_v47 }
 0x1f9   : >> { %v746_v50 = vrot.slane %v745_v49, 1 }
 0x1fa   : >> { %v1239_v51 = vpop.f32.mrb[14].mxu1 }
 0x1fb   : >> { %v747_v52 = vmax.f32 %v745_v49, %v746_v50  ;;  %v647_v53 = vpop.f32.mrb[15].mxu1  ;;  %v753_v57 = vsel %vm656_vm2, %v1239_v51, -inf }
 0x1fc   : >> { %v751_v54 = vsel %vm656_vm2, %v647_v53, -inf }
 0x1fd   : >> { %v781_v55 = vsel %vm780_vm8, %v747_v52, %v779_v37  ;;  %v752_v56 = vmax.f32 %v750_v48, %v751_v54  ;;  %v886_v37 = vld [vmem:[%s1671_s2 + $0x18] sm:$0xff] (%p205_p12) }
 0x1ff   : >> { %v754_v58 = vmax.f32 %v752_v56, %v753_v57 }
 0x201   : >> { %v755_v59 = vrot.slane %v754_v58, 4 }
 0x203   : >> { %v756_v60 = vmax.f32 %v754_v58, %v755_v59 }
 0x205   : >> { %v757_v61 = vrot.slane %v756_v60, 2 }
 0x207   : >> { %v758_v62 = vmax.f32 %v756_v60, %v757_v61 }
 0x208   : > { %207 = sbr.rel (!%p205_p12) target bundleno = 26 (0x1a), region = 79 }
 0x209   : >> { %v759_v63 = vrot.slane %v758_v62, 1 }
 0x20b   : >> { %v760_v0 = vmax.f32 %v758_v62, %v759_v63 }
 0x20d   : >> { %v783_v1 = vsel %vm782_vm9, %v760_v0, %v781_v55 }
 0x20e   : >> { %786 = vst.msk [vmem:[%s785_s27] sm:$0xff] %vm656_vm2, %v783_v1 }
 0x215   : > { %v803_v2 = vld [vmem:[#allocation2 + $0x80] sm:$0xff]  ;;  %v804_v4 = vld [vmem:[#allocation2 + $0x88] sm:$0xff]  ;;  %v805_v6 = vld [vmem:[#allocation2 + $0x90] sm:$0xff] }
 0x216   : > { %v787_v3 = vld [vmem:[#allocation2] sm:$0xff]  ;;  %851 = vxpose.xlu1.b32.start [1/16] (narrow) %v803_v2, 64  ;;  %v788_v5 = vld [vmem:[#allocation2 + $0x8] sm:$0xff]  ;;  %v789_v7 = vld [vmem:[#allocation2 + $0x10] sm:$0xff] }
 0x217   : > { %819 = vxpose.xlu0.b32.start [1/16] (narrow) %v787_v3, 64  ;;  %v806_v8 = vld [vmem:[#allocation2 + $0x98] sm:$0xff]  ;;  %v807_v10 = vld [vmem:[#allocation2 + $0xa0] sm:$0xff]  ;;  %v808_v12 = vld [vmem:[#allocation2 + $0xa8] sm:$0xff] }
 0x218   : > { %v790_v9 = vld [vmem:[#allocation2 + $0x18] sm:$0xff]  ;;  %v791_v11 = vld [vmem:[#allocation2 + $0x20] sm:$0xff]  ;;  %v792_v13 = vld [vmem:[#allocation2 + $0x28] sm:$0xff] }
 0x219   : > { %v809_v14 = vld [vmem:[#allocation2 + $0xb0] sm:$0xff]  ;;  %v810_v16 = vld [vmem:[#allocation2 + $0xb8] sm:$0xff]  ;;  %v811_v18 = vld [vmem:[#allocation2 + $0xc0] sm:$0xff] }
 0x21a   : > { %852 = vxpose.xlu1.b32.cont [2/16] (narrow) %v804_v4, 64  ;;  %v793_v15 = vld [vmem:[#allocation2 + $0x30] sm:$0xff]  ;;  %v794_v17 = vld [vmem:[#allocation2 + $0x38] sm:$0xff]  ;;  %v795_v19 = vld [vmem:[#allocation2 + $0x40] sm:$0xff] }
 0x21b   : > { %820 = vxpose.xlu0.b32.cont [2/16] (narrow) %v788_v5, 64  ;;  %v812_v20 = vld [vmem:[#allocation2 + $0xc8] sm:$0xff]  ;;  %v813_v22 = vld [vmem:[#allocation2 + $0xd0] sm:$0xff]  ;;  %v814_v24 = vld [vmem:[#allocation2 + $0xd8] sm:$0xff] }
 0x21c   : > { %v796_v21 = vld [vmem:[#allocation2 + $0x48] sm:$0xff]  ;;  %v797_v23 = vld [vmem:[#allocation2 + $0x50] sm:$0xff]  ;;  %v798_v25 = vld [vmem:[#allocation2 + $0x58] sm:$0xff] }
 0x21d   : > { %v815_v26 = vld [vmem:[#allocation2 + $0xe0] sm:$0xff]  ;;  %v816_v28 = vld [vmem:[#allocation2 + $0xe8] sm:$0xff]  ;;  %v817_v30 = vld [vmem:[#allocation2 + $0xf0] sm:$0xff] }
 0x21e   : > { %853 = vxpose.xlu1.b32.cont [3/16] (narrow) %v805_v6, 64  ;;  %v799_v27 = vld [vmem:[#allocation2 + $0x60] sm:$0xff]  ;;  %v800_v29 = vld [vmem:[#allocation2 + $0x68] sm:$0xff]  ;;  %v801_v31 = vld [vmem:[#allocation2 + $0x70] sm:$0xff] }
 0x21f   : > { %821 = vxpose.xlu0.b32.cont [3/16] (narrow) %v789_v7, 64  ;;  %v818_v32 = vld [vmem:[#allocation2 + $0xf8] sm:$0xff] }
 0x220   : > { %v802_v33 = vld [vmem:[#allocation2 + $0x78] sm:$0xff] }
 0x222   : > { %854 = vxpose.xlu1.b32.cont [4/16] (narrow) %v806_v8, 64 }
 0x223   : > { %822 = vxpose.xlu0.b32.cont [4/16] (narrow) %v790_v9, 64 }
 0x226   : > { %855 = vxpose.xlu1.b32.cont [5/16] (narrow) %v807_v10, 64 }
 0x227   : > { %823 = vxpose.xlu0.b32.cont [5/16] (narrow) %v791_v11, 64 }
 0x22a   : > { %856 = vxpose.xlu1.b32.cont [6/16] (narrow) %v808_v12, 64 }
 0x22b   : > { %824 = vxpose.xlu0.b32.cont [6/16] (narrow) %v792_v13, 64 }
 0x22e   : > { %857 = vxpose.xlu1.b32.cont [7/16] (narrow) %v809_v14, 64 }
 0x22f   : > { %825 = vxpose.xlu0.b32.cont [7/16] (narrow) %v793_v15, 64 }
 0x232   : > { %858 = vxpose.xlu1.b32.cont [8/16] (narrow) %v810_v16, 64 }
 0x233   : > { %826 = vxpose.xlu0.b32.cont [8/16] (narrow) %v794_v17, 64 }
 0x236   : > { %859 = vxpose.xlu1.b32.cont [9/16] (narrow) %v811_v18, 64 }
 0x237   : > { %827 = vxpose.xlu0.b32.cont [9/16] (narrow) %v795_v19, 64 }
 0x23a   : > { %860 = vxpose.xlu1.b32.cont [10/16] (narrow) %v812_v20, 64 }
 0x23b   : > { %828 = vxpose.xlu0.b32.cont [10/16] (narrow) %v796_v21, 64 }
 0x23e   : > { %861 = vxpose.xlu1.b32.cont [11/16] (narrow) %v813_v22, 64 }
 0x23f   : > { %829 = vxpose.xlu0.b32.cont [11/16] (narrow) %v797_v23, 64 }
 0x242   : > { %862 = vxpose.xlu1.b32.cont [12/16] (narrow) %v814_v24, 64 }
 0x243   : > { %830 = vxpose.xlu0.b32.cont [12/16] (narrow) %v798_v25, 64 }
 0x246   : > { %863 = vxpose.xlu1.b32.cont [13/16] (narrow) %v815_v26, 64 }
 0x247   : > { %831 = vxpose.xlu0.b32.cont [13/16] (narrow) %v799_v27, 64 }
 0x24a   : > { %864 = vxpose.xlu1.b32.cont [14/16] (narrow) %v816_v28, 64 }
 0x24b   : > { %832 = vxpose.xlu0.b32.cont [14/16] (narrow) %v800_v29, 64 }
 0x24e   : > { %865 = vxpose.xlu1.b32.cont [15/16] (narrow) %v817_v30, 64 }
 0x24f   : > { %833 = vxpose.xlu0.b32.cont [15/16] (narrow) %v801_v31, 64 }
 0x252   : > { %866 = vxpose.xlu1.b32.end [16/16] (narrow) %v818_v32, 64 }
 0x253   : > { %834 = vxpose.xlu0.b32.end [16/16] (narrow) %v802_v33, 64 }
 0x270   : > { %1311 = vset.pattern.permute.xlu1 %v1401_v35 }
 0x271   : > { %898 = vperm.xlu1 %1311, %v884_v34  }
 0x275   : > { %903 = vperm.xlu1 %1311, %v885_v36  }
 0x279   : > { %908 = vperm.xlu1 %1311, %v886_v37  }
 0x27c   : > { %1310 = vset.pattern.permute.xlu0 %v1401_v35 }
 0x27d   : > { %893 = vperm.xlu0 %1310, %v883_v38   ;;  %913 = vperm.xlu1 %1311, %v887_v39  }
 0x281   : > { %918 = vperm.xlu0 %1310, %v888_v40   ;;  %923 = vperm.xlu1 %1311, %v889_v41  }
 0x285   : > { %928 = vperm.xlu0 %1310, %v890_v42  }
 0x296   : > { %v867_v43 = vpop.trf.xlu1 }
 0x297   : > { %v835_v45 = vpop.trf.xlu0 }
 0x29a   : > { %v868_v44 = vpop.trf.xlu1 }
 0x29b   : > { %v836_v47 = vpop.trf.xlu0 }
 0x29e   : > { %v869_v46 = vpop.trf.xlu1 }
 0x29f   : > { %v837_v49 = vpop.trf.xlu0 }
 0x2a2   : > { %v870_v48 = vpop.trf.xlu1 }
 0x2a3   : > { %v838_v51 = vpop.trf.xlu0 }
 0x2a6   : > { %v871_v50 = vpop.trf.xlu1 }
 0x2a7   : > { %v839_v53 = vpop.trf.xlu0 }
 0x2aa   : > { %v872_v52 = vpop.trf.xlu1 }
 0x2ab   : > { %v840_v55 = vpop.trf.xlu0 }
 0x2ae   : > { %v873_v54 = vpop.trf.xlu1 }
 0x2af   : > { %v841_v57 = vpop.trf.xlu0 }
 0x2b2   : > { %v874_v56 = vpop.trf.xlu1 }
 0x2b3   : > { %v842_v2 = vpop.trf.xlu0 }
 0x2f0   : > { %v899_v58 = vpop.permute.xlu1 %898 }
 0x2f1   : > { %v933_v59 = vadd.f32 %v899_v58, %v836_v47  ;;  %v934_v60 = vadd.f32 %v899_v58, %v868_v44 }
 0x2f3   : > { %v949_v61 = vmax.f32 %v933_v59, 0.0  ;;  %v950_v62 = vmax.f32 %v934_v60, 0.0 }
 0x2f4   : > { %v904_v63 = vpop.permute.xlu1 %903 }
 0x2f5   : > { %965 = vst [vmem:[%s1490_s6 + $0x10] sm:$0xff] %v949_v61  ;;  %966 = vst [vmem:[%s1490_s6 + $0x18] sm:$0xff] %v950_v62  ;;  %v935_v0 = vadd.f32 %v904_v63, %v837_v49  ;;  %v936_v1 = vadd.f32 %v904_v63, %v869_v46 }
 0x2f7   : > { %v951_v3 = vmax.f32 %v935_v0, 0.0  ;;  %v952_v4 = vmax.f32 %v936_v1, 0.0 }
 0x2f8   : > { %v909_v5 = vpop.permute.xlu1 %908 }
 0x2f9   : > { %967 = vst [vmem:[%s1490_s6 + $0x20] sm:$0xff] %v951_v3  ;;  %968 = vst [vmem:[%s1490_s6 + $0x28] sm:$0xff] %v952_v4  ;;  %v937_v6 = vadd.f32 %v909_v5, %v838_v51  ;;  %v938_v7 = vadd.f32 %v909_v5, %v870_v48 }
 0x2fb   : > { %v953_v8 = vmax.f32 %v937_v6, 0.0  ;;  %v954_v9 = vmax.f32 %v938_v7, 0.0 }
 0x2fc   : > { %v894_v10 = vpop.permute.xlu0 %893  ;;  %v914_v13 = vpop.permute.xlu1 %913 }
 0x2fd   : > { %v931_v11 = vadd.f32 %v894_v10, %v835_v45  ;;  %v932_v12 = vadd.f32 %v894_v10, %v867_v43  ;;  %969 = vst [vmem:[%s1490_s6 + $0x30] sm:$0xff] %v953_v8  ;;  %970 = vst [vmem:[%s1490_s6 + $0x38] sm:$0xff] %v954_v9  ;;  %v939_v14 = vadd.f32 %v914_v13, %v839_v53 }
 0x2fe   : > { %v940_v15 = vadd.f32 %v914_v13, %v871_v50 }
 0x2ff   : > { %v947_v16 = vmax.f32 %v931_v11, 0.0  ;;  %v948_v17 = vmax.f32 %v932_v12, 0.0  ;;  %v955_v18 = vmax.f32 %v939_v14, 0.0 }
 0x300   : > { %v956_v19 = vmax.f32 %v940_v15, 0.0  ;;  %v919_v20 = vpop.permute.xlu0 %918  ;;  %v924_v23 = vpop.permute.xlu1 %923 }
 0x301   : > { %963 = vst [vmem:[%s1490_s6] sm:$0xff] %v947_v16  ;;  %964 = vst [vmem:[%s1490_s6 + $0x8] sm:$0xff] %v948_v17  ;;  %v941_v21 = vadd.f32 %v919_v20, %v840_v55  ;;  %v942_v22 = vadd.f32 %v919_v20, %v872_v52  ;;  %v943_v24 = vadd.f32 %v924_v23, %v841_v57 }
 0x302   : > { %971 = vst [vmem:[%s1490_s6 + $0x40] sm:$0xff] %v955_v18  ;;  %972 = vst [vmem:[%s1490_s6 + $0x48] sm:$0xff] %v956_v19  ;;  %v944_v25 = vadd.f32 %v924_v23, %v873_v54 }
 0x303   : > { %v957_v26 = vmax.f32 %v941_v21, 0.0  ;;  %v958_v27 = vmax.f32 %v942_v22, 0.0  ;;  %v959_v28 = vmax.f32 %v943_v24, 0.0 }
 0x304   : > { %v960_v29 = vmax.f32 %v944_v25, 0.0  ;;  %v929_v30 = vpop.permute.xlu0 %928 }
 0x305   : > { %973 = vst [vmem:[%s1490_s6 + $0x50] sm:$0xff] %v957_v26  ;;  %974 = vst [vmem:[%s1490_s6 + $0x58] sm:$0xff] %v958_v27  ;;  %v945_v31 = vadd.f32 %v929_v30, %v842_v2  ;;  %v946_v32 = vadd.f32 %v929_v30, %v874_v56 }
 0x306   : > { %975 = vst [vmem:[%s1490_s6 + $0x60] sm:$0xff] %v959_v28  ;;  %976 = vst [vmem:[%s1490_s6 + $0x68] sm:$0xff] %v960_v29 }
 0x307   : > { %v961_v33 = vmax.f32 %v945_v31, 0.0  ;;  %v962_v34 = vmax.f32 %v946_v32, 0.0 }
 0x309   : > { %977 = vst [vmem:[%s1490_s6 + $0x70] sm:$0xff] %v961_v33  ;;  %978 = vst [vmem:[%s1490_s6 + $0x78] sm:$0xff] %v962_v34 }
 0x30a   : > { %1325 = shalt.err (!%p1322_p6)
}
 0x30b   : > { %s1326_s26 = scalar_lea.hbm %s1615_s7, 2048  ;;  %s1330_s19 = scalar_lea.hbm %s1672_s3, 4096 }
 0x30c   : > { %p1327_p7 = scmp.ne.s32.totalorder %s1615_s7, %s1326_s26  ;;  %p1331_p11 = scmp.lt.u32.totalorder %s1615_s7, %s1672_s3 }
 0x30d   : > { %p1332_p12 = scmp.lt.u32.totalorder %s1330_s19, %s1326_s26  ;;  %p1334_p0 = scmp.lt.u32.totalorder %s1326_s26, %s1615_s7 }
 0x30e   : > { %p1328_p9 = pnand %p1327_p7, %p1465_p4 }
 0x30f   : > { %p1333_p13 = por %p1332_p12, %p1331_p11 }
 0x310   : > { %p1329_p10 = pneg %p1328_p9 }
 0x311   : > { %p1335_p1 = por %p1334_p0, %p1333_p13 }
 0x313   : > { %p1336_p2 = pnand %p1335_p1, %p1329_p10 }
 0x315   : > { %1339 = shalt.err (!%p1336_p2)
}
 0x316   : > { %s1403_s27 = smov 256   ;;  %s1404_s28 = smov 16  }
 0x317   : > { %1242 = dma.vmem_to_hbm [thread:$0]  (%p1465_p4), %s1617_s30, 2048, %s1615_s7, %s1623_s15, %s1403_s27, %s1403_s27, %s1404_s28  }
 0x318 PF: > { %p1248_p3 = scmp.ge.s32.totalorder %s1394_s17, 2  ;;  %s1010_s29 = sand.u32 1, %s1374_s12  }
 0x319   : > { %s1011_s4 = scalar_lea.sflag [#allocation4], %s1010_s29 }
 0x31a   : > { %p1245_p5 = pnand %p1248_p3, %p1472_p8 }
 0x31c   : > { %1369 = dma.done.wait (!%p1245_p5), %s1011_s4, 2048  }
 0x31d   : > { %1371 = vsyncadd (!%p1245_p5), %s1011_s4, 4294965248  ;;  %s16_s17 = sadd.s32 1, %s1394_s17   ;;  %s1675_s12 = smov %s1378_s13 }
 0x31e   : > { %p13_p6 = scmp.ge.s32.totalorder %s16_s17, 4   ;;  %s1676_s13 = smov %s1382_s14 }
 0x31f   : > { %s1677_s14 = smov %s1478_s25  ;;  %s1678_s15 = smov %s1390_s16 }
 0x320   : > { %s1679_s16 = smov %s1681_s20  ;;  %15 = sbr.rel (!%p13_p6) target bundleno = 4 (0x4), region = 90 }
 0x327   :  { %1016 = vsyncpa [#allocation4], 1 }
 0x328   :  { %1018 = vsyncpa [#allocation4 + $0x1], 1 }

</bundles_post_ra>
